<compile_context>
chip_gen: v7x
topology: tpu7x:2x2x1
jax: 0.10.0
libtpu: 0.0.40
codegen_flags: <defaults>
</compile_context>

<pallas_src>
import functools

import jax
import jax.numpy as jnp
from jax.experimental import pallas as pl
from jax.experimental.pallas import tpu as pltpu

# TODO(synk): the inner `self.model` sentence encoder is an arbitrary nn.Module
# and is not part of this kernel; it is replaced by direct embedding inputs.

_VMEM_BUDGET = 24 << 20  # conservative vs v7x's 32 MiB scoped default


def _round_up(x, m):
    return ((x + m - 1) // m) * m


def _vmem_need_bytes(tb, d, lp, itemsize):
    return (2 * 2 * tb * d * itemsize      # rep_a + rep_b, double-buffered
            + 2 * 3 * d * lp * itemsize    # resident weight (x2 alloc, safe)
            + 2 * lp * 4                   # resident bias (f32)
            + 2 * tb * 4                   # labels blocks (i32)
            + 2 * tb * 4                   # nll output blocks (f32)
            + 4 * tb * lp * 4)             # f32 logits / softmax temporaries


def _pick_tile_b(batch, d, lp, itemsize):
    cap = _round_up(batch, 8)
    cands = sorted({c for c in (1024, 512, 256, 128, 64, 32, 16, 8, cap)
                    if c <= min(cap, 1024)}, reverse=True)
    for tb in cands:
        if _vmem_need_bytes(tb, d, lp, itemsize) <= _VMEM_BUDGET:
            return tb
    return cands[-1]


def softmax_loss_kernel(a_ref, b_ref, w_ref, bias_ref, labels_ref, nll_ref):
    a = a_ref[...]                                   # (TB, D) native dtype
    b = b_ref[...]                                   # (TB, D)
    d = jnp.abs(a - b)                               # native dtype (bf16 VALU
                                                     # on v6e/v7x; no f32 trip)

    # logits = [a, b, |a-b|] @ W (+ bias): three MXU dots against the resident
    # (3, D, LP) weight block; f32 accumulation.
    logits = (
        jnp.dot(a, w_ref[0], preferred_element_type=jnp.float32)
        + jnp.dot(b, w_ref[1], preferred_element_type=jnp.float32)
        + jnp.dot(d, w_ref[2], preferred_element_type=jnp.float32)
        + bias_ref[...]                              # (1, LP) f32, broadcast
    )                                                # (TB, LP) f32

    # Numerically-stable cross-entropy: nll = (m + lse) - logit[label].
    m = jnp.max(logits, axis=-1, keepdims=True)                          # (TB,1)
    lse = jnp.log(jnp.sum(jnp.exp(logits - m), axis=-1, keepdims=True))  # (TB,1)

    labels = labels_ref[...]                                             # (TB,1)
    col = jax.lax.broadcasted_iota(jnp.int32, logits.shape, 1)
    label_logit = jnp.sum(jnp.where(col == labels, logits, 0.0),
                          axis=-1, keepdims=True)                        # (TB,1)

    # Per-row NLL.  Rows past the true batch in a partial last block compute
    # garbage here but are never written back to HBM by Pallas.
    nll_ref[...] = (m + lse) - label_logit


def softmax_loss(rep_a, rep_b, weight_t, bias, labels, *, tile_b=None):
    """rep_a, rep_b: (B, D) float; weight_t: (3D, L) float (transpose of the
    nn.Linear weight); bias: (L,) float; labels: (B,) int.
    Returns the scalar f32 mean cross-entropy loss."""
    B, D = rep_a.shape
    K, L = weight_t.shape
    assert K == 3 * D, "classifier weight must be (3*D, num_labels)"

    itemsize = jnp.dtype(rep_a.dtype).itemsize
    LP = _round_up(max(L, 128), 128)                 # lane-dense logits (=128)

    if tile_b is None:
        tile_b = _pick_tile_b(B, D, LP, itemsize)
    tile_b = min(_round_up(tile_b, 8), _round_up(B, 8))
    num_tiles = pl.cdiv(B, tile_b)                   # no host-side batch pad

    # --- operand prep (cheap, one-time) --------------------------------------
    # Weight in the embedding dtype (native bf16 MXU path for bf16 inputs),
    # reshaped to (3, D, L) so the concat is never formed, zero-padded to LP.
    w = weight_t.astype(rep_a.dtype).reshape(3, D, L)
    wpad = jnp.zeros((3, D, LP), dtype=w.dtype).at[:, :, :L].set(w)
    # Padded bias columns get -1e30 (kept f32) so fake classes vanish in softmax.
    bias_pad = jnp.full((1, LP), -1e30, dtype=jnp.float32)
    bias_pad = bias_pad.at[0, :L].set(bias.astype(jnp.float32))
    labels2d = labels.astype(jnp.int32).reshape(B, 1)

    vmem_need = _vmem_need_bytes(tile_b, D, LP, itemsize)
    vmem_limit = int(min(32 << 20, max(16 << 20, vmem_need + (4 << 20))))

    cost = pl.CostEstimate(
        flops=2 * B * 3 * D * LP,
        transcendentals=B * LP,
        bytes_accessed=(2 * B * D * itemsize + 3 * D * LP * itemsize
                        + LP * 4 + B * 4 + B * 4),
    )

    nll = pl.pallas_call(
        softmax_loss_kernel,
        out_shape=jax.ShapeDtypeStruct((B, 1), jnp.float32),
        grid=(num_tiles,),
        in_specs=[
            pl.BlockSpec((tile_b, D), lambda i: (i, 0)),     # rep_a tile
            pl.BlockSpec((tile_b, D), lambda i: (i, 0)),     # rep_b tile
            pl.BlockSpec((3, D, LP), lambda i: (0, 0, 0)),   # weight (resident)
            pl.BlockSpec((1, LP), lambda i: (0, 0)),         # bias   (resident)
            pl.BlockSpec((tile_b, 1), lambda i: (i, 0)),     # labels tile
        ],
        out_specs=pl.BlockSpec((tile_b, 1), lambda i: (i, 0)),
        compiler_params=pltpu.CompilerParams(
            dimension_semantics=("parallel",),               # shards TCs on v7x
            vmem_limit_bytes=vmem_limit),
        cost_estimate=cost,
    )(rep_a, rep_b, wpad, bias_pad, labels2d)

    return jnp.sum(nll) / B


def _reference(rep_a, rep_b, weight_t, bias, labels):
    feats = jnp.concatenate([rep_a, rep_b, jnp.abs(rep_a - rep_b)], axis=1)
    logits = feats @ weight_t + bias
    logp = jax.nn.log_softmax(logits, axis=-1)
    nll = -jnp.take_along_axis(logp, labels[:, None].astype(jnp.int32), axis=1)
    return jnp.mean(nll)


def _make_inputs(key, B, D, L):
    k_a, k_b, k_w, k_bias, k_lab = jax.random.split(key, 5)
    rep_a = jax.random.normal(k_a, (B, D), dtype=jnp.float32)
    rep_b = jax.random.normal(k_b, (B, D), dtype=jnp.float32)
    # nn.Linear(3*D, L) init: uniform(-1/sqrt(fan_in), 1/sqrt(fan_in)).
    bound = 1.0 / (3 * D) ** 0.5
    weight_t = jax.random.uniform(k_w, (3 * D, L), jnp.float32, -bound, bound)
    bias = jax.random.uniform(k_bias, (L,), jnp.float32, -bound, bound)
    labels = jax.random.randint(k_lab, (B,), 0, L, dtype=jnp.int32)
    return rep_a, rep_b, weight_t, bias, labels


if __name__ == "__main__":
    D = 32                   # sentence_embedding_dimension
    L = 3                    # num_labels (NLI: entail / neutral / contradict)
    key = jax.random.PRNGKey(0)
    k1, k2 = jax.random.split(key)

    # Case 1: small aligned batch.
    rep_a, rep_b, weight_t, bias, labels = _make_inputs(k1, 8, D, L)
    loss = jax.block_until_ready(
        softmax_loss(rep_a, rep_b, weight_t, bias, labels))
    ref = _reference(rep_a, rep_b, weight_t, bias, labels)
    assert jnp.allclose(loss, ref, atol=1e-5, rtol=1e-5), (loss, ref)

    # Case 2: batch not divisible by the tile -> exercises the partial last
    # block path that replaced the host-side jnp.pad.
    rep_a, rep_b, weight_t, bias, labels = _make_inputs(k2, 100, D, L)
    loss = jax.block_until_ready(
        softmax_loss(rep_a, rep_b, weight_t, bias, labels, tile_b=64))
    ref = _reference(rep_a, rep_b, weight_t, bias, labels)
    assert jnp.allclose(loss, ref, atol=1e-5, rtol=1e-5), (loss, ref)

    print("KERNEL_OK")
</pallas_src>

<mosaic_0001>
module attributes {stable_mosaic.version = 11 : i64} {
  func.func @softmax_loss_kernel(%arg0: i32, %arg1: memref<8x32xf32, #tpu.memory_space<vmem>>, %arg2: memref<8x32xf32, #tpu.memory_space<vmem>>, %arg3: memref<3x32x128xf32, #tpu.memory_space<vmem>>, %arg4: memref<1x128xf32, #tpu.memory_space<vmem>>, %arg5: memref<8x1xi32, #tpu.memory_space<vmem>>, %arg6: memref<8x1xf32, #tpu.memory_space<vmem>>) attributes {dimension_semantics = [#tpu.dimension_semantics<parallel>], iteration_bounds = array<i64: 1>, scalar_prefetch = 0 : i64, scratch_operands = 0 : i64, tpu.core_type = #tpu.core_type<tc>, window_params = [{transform_indices = @transform_0, window_bounds = array<i64: 8, 32>}, {transform_indices = @transform_1, window_bounds = array<i64: 8, 32>}, {pipeline_mode = #tpu.pipeline_mode<synchronous>, transform_indices = @transform_2, window_bounds = array<i64: 3, 32, 128>}, {pipeline_mode = #tpu.pipeline_mode<synchronous>, transform_indices = @transform_3, window_bounds = array<i64: 1, 128>}, {transform_indices = @transform_4, window_bounds = array<i64: 8, 1>}, {transform_indices = @transform_5, window_bounds = array<i64: 8, 1>}]} {
    %c0 = arith.constant 0 : index
    %c0_0 = arith.constant 0 : index
    %0 = vector.load %arg1[%c0, %c0_0] : memref<8x32xf32, #tpu.memory_space<vmem>>, vector<8x32xf32>
    %c0_1 = arith.constant 0 : index
    %c0_2 = arith.constant 0 : index
    %1 = vector.load %arg2[%c0_1, %c0_2] : memref<8x32xf32, #tpu.memory_space<vmem>>, vector<8x32xf32>
    %2 = arith.subf %0, %1 : vector<8x32xf32>
    %3 = math.absf %2 : vector<8x32xf32>
    %c0_3 = arith.constant 0 : index
    %c0_4 = arith.constant 0 : index
    %c0_5 = arith.constant 0 : index
    %4 = vector.load %arg3[%c0_3, %c0_4, %c0_5] : memref<3x32x128xf32, #tpu.memory_space<vmem>>, vector<1x32x128xf32>
    %5 = vector.shape_cast %4 : vector<1x32x128xf32> to vector<32x128xf32>
    %cst = arith.constant dense<0.000000e+00> : vector<8x128xf32>
    %6 = tpu.matmul %0, %5, %cst {dimension_numbers = #tpu.dot_dimension_numbers<[1], [0], [0], [1], [0, 0, 1, 1], [], []>} : vector<8x32xf32>, vector<32x128xf32>, vector<8x128xf32> -> vector<8x128xf32>
    %c1 = arith.constant 1 : index
    %c0_6 = arith.constant 0 : index
    %c0_7 = arith.constant 0 : index
    %7 = vector.load %arg3[%c1, %c0_6, %c0_7] : memref<3x32x128xf32, #tpu.memory_space<vmem>>, vector<1x32x128xf32>
    %8 = vector.shape_cast %7 : vector<1x32x128xf32> to vector<32x128xf32>
    %cst_8 = arith.constant dense<0.000000e+00> : vector<8x128xf32>
    %9 = tpu.matmul %1, %8, %cst_8 {dimension_numbers = #tpu.dot_dimension_numbers<[1], [0], [0], [1], [0, 0, 1, 1], [], []>} : vector<8x32xf32>, vector<32x128xf32>, vector<8x128xf32> -> vector<8x128xf32>
    %10 = arith.addf %6, %9 : vector<8x128xf32>
    %c2 = arith.constant 2 : index
    %c0_9 = arith.constant 0 : index
    %c0_10 = arith.constant 0 : index
    %11 = vector.load %arg3[%c2, %c0_9, %c0_10] : memref<3x32x128xf32, #tpu.memory_space<vmem>>, vector<1x32x128xf32>
    %12 = vector.shape_cast %11 : vector<1x32x128xf32> to vector<32x128xf32>
    %cst_11 = arith.constant dense<0.000000e+00> : vector<8x128xf32>
    %13 = tpu.matmul %3, %12, %cst_11 {dimension_numbers = #tpu.dot_dimension_numbers<[1], [0], [0], [1], [0, 0, 1, 1], [], []>} : vector<8x32xf32>, vector<32x128xf32>, vector<8x128xf32> -> vector<8x128xf32>
    %14 = arith.addf %10, %13 : vector<8x128xf32>
    %c0_12 = arith.constant 0 : index
    %c0_13 = arith.constant 0 : index
    %15 = vector.load %arg4[%c0_12, %c0_13] : memref<1x128xf32, #tpu.memory_space<vmem>>, vector<1x128xf32>
    %16 = vector.broadcast %15 : vector<1x128xf32> to vector<8x128xf32>
    %17 = arith.addf %14, %16 : vector<8x128xf32>
    %cst_14 = arith.constant dense<0xFF800000> : vector<8xf32>
    %18 = vector.multi_reduction <maximumf>, %17, %cst_14 [1] : vector<8x128xf32> to vector<8xf32>
    %19 = vector.shape_cast %18 : vector<8xf32> to vector<8x1xf32>
    %20 = vector.broadcast %19 : vector<8x1xf32> to vector<8x128xf32>
    %21 = arith.subf %17, %20 : vector<8x128xf32>
    %22 = math.exp %21 : vector<8x128xf32>
    %cst_15 = arith.constant dense<0.000000e+00> : vector<8xf32>
    %23 = vector.multi_reduction <add>, %22, %cst_15 [1] : vector<8x128xf32> to vector<8xf32>
    %24 = vector.shape_cast %23 : vector<8xf32> to vector<8x1xf32>
    %25 = math.log %24 : vector<8x1xf32>
    %c0_16 = arith.constant 0 : index
    %c0_17 = arith.constant 0 : index
    %26 = vector.load %arg5[%c0_16, %c0_17] : memref<8x1xi32, #tpu.memory_space<vmem>>, vector<8x1xi32>
    %27 = tpu.iota {dimensions = array<i32: 1>} : vector<8x128xi32>
    %28 = vector.broadcast %26 : vector<8x1xi32> to vector<8x128xi32>
    %29 = arith.cmpi eq, %27, %28 : vector<8x128xi32>
    %cst_18 = arith.constant 0.000000e+00 : f32
    %30 = vector.broadcast %cst_18 : f32 to vector<8x128xf32>
    %31 = arith.select %29, %17, %30 : vector<8x128xi1>, vector<8x128xf32>
    %cst_19 = arith.constant dense<0.000000e+00> : vector<8xf32>
    %32 = vector.multi_reduction <add>, %31, %cst_19 [1] : vector<8x128xf32> to vector<8xf32>
    %33 = vector.shape_cast %32 : vector<8xf32> to vector<8x1xf32>
    %34 = arith.addf %19, %25 : vector<8x1xf32>
    %35 = arith.subf %34, %33 : vector<8x1xf32>
    %c0_20 = arith.constant 0 : index
    %c0_21 = arith.constant 0 : index
    %36 = vector.load %arg6[%c0_20, %c0_21] : memref<8x1xf32, #tpu.memory_space<vmem>>, vector<8x1xf32>
    tpu.vector_store %arg6[%c0_20, %c0_21], %35 {strides = array<i32>} : memref<8x1xf32, #tpu.memory_space<vmem>>, vector<8x1xf32>,
    return
  }
  func.func @transform_0(%arg0: i32) -> (i32, i32) {
    %c0_i32 = arith.constant 0 : i32
    %c0_i32_0 = arith.constant 0 : i32
    return %arg0, %c0_i32 : i32, i32
  }
  func.func @transform_1(%arg0: i32) -> (i32, i32) {
    %c0_i32 = arith.constant 0 : i32
    %c0_i32_0 = arith.constant 0 : i32
    return %arg0, %c0_i32 : i32, i32
  }
  func.func @transform_2(%arg0: i32) -> (i32, i32, i32) {
    %c0_i32 = arith.constant 0 : i32
    %c0_i32_0 = arith.constant 0 : i32
    %c0_i32_1 = arith.constant 0 : i32
    %c0_i32_2 = arith.constant 0 : i32
    return %c0_i32, %c0_i32_0, %c0_i32_1 : i32, i32, i32
  }
  func.func @transform_3(%arg0: i32) -> (i32, i32) {
    %c0_i32 = arith.constant 0 : i32
    %c0_i32_0 = arith.constant 0 : i32
    %c0_i32_1 = arith.constant 0 : i32
    return %c0_i32, %c0_i32_0 : i32, i32
  }
  func.func @transform_4(%arg0: i32) -> (i32, i32) {
    %c0_i32 = arith.constant 0 : i32
    %c0_i32_0 = arith.constant 0 : i32
    return %arg0, %c0_i32 : i32, i32
  }
  func.func @transform_5(%arg0: i32) -> (i32, i32) {
    %c0_i32 = arith.constant 0 : i32
    %c0_i32_0 = arith.constant 0 : i32
    return %arg0, %c0_i32 : i32, i32
  }
}

</mosaic_0001>

<bundles_post_ra>
// kernel: tpu_custom_call.1
= control target key start
LH: loop header
LB: loop body
LE: loop exit
PB: predicated region body
PF: predicated region fallthrough
CT: control target
= control target key end

     0   :  { %10 = vsyncpa [#allocation3], 0  ;;  %s540_s0 = inlined_call_operand.vmem [shape: f32[8,32], index: 0, kind: input, shape index: {}]   ;;  %s541_s1 = inlined_call_operand.hbm [shape: f32[8,32], index: 1, kind: input, shape index: {}]   ;;  %s542_s2 = inlined_call_operand.hbm [shape: f32[3,32,128], index: 2, kind: input, shape index: {}]   ;;  %s543_s3 = inlined_call_operand.vmem [shape: f32[1,128], index: 3, kind: input, shape index: {}]   ;;  %s544_s4 = inlined_call_operand.vmem [shape: s32[8,1], index: 4, kind: input, shape index: {}]   ;;  %s545_s5 = inlined_call_operand.vmem [shape: f32[8,1], index: 5, kind: output, shape index: {}]  }
   0x1   :  { %11 = vsyncpa [#allocation5], 0  ;;  %s453_s18 = smov [#allocation2]   ;;  %s454_s20 = smov [#allocation4]  }
   0x2   :  { %s20_s19 = sshll.u32 %s453_s18, 4  ;;  %s29_s21 = sshll.u32 %s454_s20, 4  ;;  %s21_s19 = int_to_ptr.vmem [resolvable:$true] %s20_s19  ;;  %s491_s21 = int_to_ptr.vmem [resolvable:$true] %s29_s21 }
   0x3   :  { %s405_s24 = scalar_lea.hbm %s541_s1, 128 }
   0x4   :  { %p406_p0 = scmp.ne.s32.totalorder %s541_s1, %s405_s24  ;;  %p409_p1 = scmp.lt.u32.totalorder %s405_s24, %s541_s1 }
   0x6   :  { %p411_p2 = pnand %p409_p1, %p406_p0 }
   0x8   :  { %414 = shalt.err (!%p411_p2)
}
   0x9   :  { %s415_s29 = scalar_lea.vmem %s21_s19, 128  ;;  %p420_p4 = scmp.lt.s32.totalorder %s21_s19, %s21_s19 }
   0xa   :  { %p416_p3 = scmp.ne.s32.totalorder %s21_s19, %s415_s29  ;;  %p421_p5 = scmp.lt.s32.totalorder %s415_s29, %s415_s29 }
   0xc   :  { %p422_p6 = por %p421_p5, %p420_p4 }
   0xe   :  { %p423_p7 = pnand %p422_p6, %p416_p3 }
  0x10   :  { %426 = shalt.err (!%p423_p7)
}
  0x11   :  { %23 = dma.hbm_to_vmem [thread:$0]  %s541_s1, 128, %s21_s19, [#allocation3]  }
  0x12   :  { %s427_s9 = scalar_lea.hbm %s542_s2, 1536 }
  0x13   :  { %p428_p8 = scmp.ne.s32.totalorder %s542_s2, %s427_s9  ;;  %p431_p9 = scmp.lt.u32.totalorder %s427_s9, %s542_s2 }
  0x15   :  { %p433_p10 = pnand %p431_p9, %p428_p8 }
  0x17   :  { %436 = shalt.err (!%p433_p10)
}
  0x18   :  { %s437_s14 = scalar_lea.vmem %s491_s21, 1536  ;;  %p442_p12 = scmp.lt.s32.totalorder %s491_s21, %s491_s21 }
  0x19   :  { %p438_p11 = scmp.ne.s32.totalorder %s491_s21, %s437_s14  ;;  %p443_p13 = scmp.lt.s32.totalorder %s437_s14, %s437_s14 }
  0x1b   :  { %p444_p0 = por %p443_p13, %p442_p12 }
  0x1d   :  { %p445_p1 = pnand %p444_p0, %p438_p11 }
  0x1f   :  { %448 = shalt.err (!%p445_p1)
}
  0x20   :  { %s455_s1 = smov 128   ;;  %s456_s15 = smov 8  }
  0x21   :  { %35 = dma.hbm_to_vmem [thread:$0]  %s542_s2, 1536, %s491_s21, [#allocation5], %s455_s1, %s455_s1, %s456_s15  }
  0x22   :  { %449 = dma.done.wait [#allocation3], 128  }
  0x23   :  { %450 = vsyncadd [#allocation3], 4294967168 }
  0x24   :  { %451 = dma.done.wait [#allocation5], 1536  }
  0x25   :  { %452 = vsyncadd [#allocation5], 4294965760  ;;  %v457_v0 = vmov 0.0|0.0   ;;  %vm458_vm0 = vmmov 0   ;;  %v459_v1 = vmov 0.0   ;;  %v55_v2 = vld [vmem:[#allocation4 + $0x20] sm:$0xff]  ;;  %v303_v39 = vlaneseq }
  0x26   :  { %374 = vmatprep.subr.bf16.mxu0 %v457_v0  ;;  %380 = vmatprep.subr.bf16.mxu1 %v457_v0  ;;  %v56_v3 = vld [vmem:[#allocation4 + $0x28] sm:$0xff]  ;;  %v50_v4 = vld [vmem:[#allocation4] sm:$0xff]  ;;  %v57_v7 = vld [vmem:[#allocation4 + $0x30] sm:$0xff]  ;;  %vm59_vm1 = vcmask 261120   ;;  %v460_v24 = vmov 0   ;;  %vm314_vm3 = vcmask 7168  }
  0x27   :  { %349 = vmatprep.mubr.msk.f32.mxu0 %vm458_vm0, %v459_v1  ;;  %360 = vmatprep.mubr.msk.f32.mxu1 %vm458_vm0, %v459_v1  ;;  %v375_v5 = vpack.c.bf16 %v56_v3, %v55_v2  ;;  %v51_v6 = vld [vmem:[#allocation4 + $0x8] sm:$0xff]  ;;  %v58_v8 = vld [vmem:[#allocation4 + $0x38] sm:$0xff]  ;;  %v52_v10 = vld [vmem:[#allocation4 + $0x10] sm:$0xff]  ;;  %v304_v40 = vand.u32 127, %v303_v39 }
  0x28   :  { %v381_v9 = vpack.c.bf16 %v51_v6, %v50_v4  ;;  %v53_v11 = vld [vmem:[#allocation4 + $0x18] sm:$0xff]  ;;  %v378_v12 = vpack.c.bf16 %v58_v8, %v57_v7  ;;  %v207_v14 = vld [vmem:[#allocation4 + $0x40] sm:$0xff]  ;;  %v208_v15 = vld [vmem:[#allocation4 + $0x48] sm:$0xff]  ;;  %400 = vset.pattern.permute.xlu0 %v460_v24 }
  0x29   :  { %376 = vmatpush3.bf16.msra.mxu0 %v375_v5  ;;  %v384_v13 = vpack.c.bf16 %v53_v11, %v52_v10  ;;  %v47_v16 = vld [vmem:[#allocation2] sm:$0xff]  ;;  %v387_v17 = vpack.c.bf16 %v208_v15, %v207_v14  ;;  %v209_v19 = vld [vmem:[#allocation4 + $0x50] sm:$0xff] }
  0x2a   :  { %382 = vmatpush3.bf16.msra.mxu1 %v381_v9  ;;  %377 = vmatprep.subr.bf16.mxu0 %v457_v0  ;;  %v46_v18 = vld [vmem:[%s540_s0] sm:$0xff] }
  0x2b   :  { %383 = vmatprep.subr.bf16.mxu1 %v457_v0  ;;  %v210_v20 = vld [vmem:[#allocation4 + $0x58] sm:$0xff]  ;;  %v48_v21 = vsub.f32 %v46_v18, %v47_v16 }
  0x2c   :  { %v390_v22 = vpack.c.bf16 %v210_v20, %v209_v19  ;;  %v325_v31 = vld [vmem:[%s543_s3] ss:$0 sm:$0xff] }
  0x2d   :  { %379 = vmatpush3.bf16.msra.mxu0 %v378_v12  ;;  %v49_v23 = vand.u32 2147483647, %v48_v21  ;;  %v302_v35 = vld [vmem:[%s544_s4] sm:$0xff] }
  0x2e   :  { %385 = vmatpush3.bf16.msra.mxu1 %v384_v13  ;;  %386 = vmatprep.subr.bf16.mxu0 %v457_v0 }
  0x30   :  { %350 = vmatmul.mubr.msk.f32.vlgmr.msra.gmra.mrb[0].mxu0 %vm59_vm1, %v47_v16 }
  0x31   :  { %361 = vmatmul.mubr.msk.f32.vlgmr.msra.gmra.mrb[0].mxu1 %vm59_vm1, %v46_v18  ;;  %388 = vmatpush3.bf16.msra.mxu0 %v387_v17 }
  0x32   :  { %389 = vmatprep.subr.bf16.mxu0 %v457_v0  ;;  %371 = vmatprep.mubr.msk.f32.mxu0 %vm458_vm0, %v459_v1 }
  0x35   :  { %391 = vmatpush3.bf16.msra.mxu0 %v390_v22 }
  0x38   :  { %372 = vmatmul.mubr.msk.f32.vlgmr.msra.gmra.mrb[2].mxu0 %vm59_vm1, %v49_v23 }
 0x103   :  { %v129_v25 = vpop.f32.mrb[0].mxu0 }
 0x104   :  { %v351_v26 = vpop.f32.mrb[1].mxu0  ;;  %v202_v27 = vpop.f32.mrb[0].mxu1 }
 0x105   :  { %v203_v28 = vadd.f32 %v202_v27, %v129_v25  ;;  %v362_v29 = vpop.f32.mrb[1].mxu1 }
 0x10b   :  { %v280_v30 = vpop.f32.mrb[2].mxu0 }
 0x10c   :  { %v284_v32 = vadd.f32 %v280_v30, %v203_v28  ;;  %v373_v33 = vpop.f32.mrb[3].mxu0 }
 0x10e   :  { %v292_v34 = vadd.f32 %v325_v31, %v284_v32 }
 0x110   :  { %293 = vmax.xlane.f32.xlu0 %v292_v34 }
 0x126   :  { %306 = vperm.xlu0 %400, %v302_v35  }
 0x19d   :  { %v294_v36 = vpop.xlane.xlu0 %293 }
 0x19e   :  { %v295_v37 = vsub.f32 %v292_v34, %v294_v36 }
 0x1a0   :  { %v296_v38 = vmul.f32 1.442695, %v295_v37 }
 0x1a2   :  { %401 = vpow2.f32 %v296_v38 }
 0x1a5   :  { %v307_v41 = vpop.permute.xlu0 %306 }
 0x1a6   :  { %vm308_vm2 = vcmp.eq.s32.totalorder %v304_v40, %v307_v41 }
 0x1a7   :  { %v309_v43 = vsel %vm308_vm2, %v292_v34, 0.0 }
 0x1ac   :  { %v402_v42 = vpop.eup %401 }
 0x1ad   :  { %298 = vadd.xlane.f32.xlu1 %v402_v42 }
 0x1b1   :  { %310 = vadd.xlane.f32.xlu1 %v309_v43 }
 0x23a   :  { %v299_v44 = vpop.xlane.xlu1 %298 }
 0x23b   :  { %403 = vlog2.f32 %v299_v44 }
 0x23e   :  { %v311_v48 = vpop.xlane.xlu1 %310 }
 0x245   :  { %v404_v45 = vpop.eup %403 }
 0x246   :  { %v301_v46 = vmul.f32 0.6931472, %v404_v45 }
 0x248   :  { %v312_v47 = vadd.f32 %v301_v46, %v294_v36 }
 0x24a   :  { %v313_v49 = vsub.f32 %v312_v47, %v311_v48 }
 0x24c   :  { %315 = vst.msk [vmem:[%s545_s5] sm:$0xff] %vm314_vm3, %v313_v49 }
 0x24d   :  { %320 = vsyncpa [#allocation3], 1 }
 0x24e   :  { %321 = vsyncpa [#allocation5], 1 }

</bundles_post_ra>
